<compile_context>
chip_gen: v6e
topology: v6e:2x2x1
jax: 0.10.0
libtpu: 0.0.40
codegen_flags: <defaults>
</compile_context>

<pallas_src>
import functools

import jax
import jax.numpy as jnp
from jax.experimental import pallas as pl
from jax.experimental.pallas import tpu as pltpu

_OUT_ROWS = 8     # one vreg-sublane-aligned output tile
_OUT_LANES = 128  # lane-dense output (single unmasked store)


# ----------------------------- Pallas kernel ------------------------------- #
def _sci_kernel(*refs):
    """refs = (head0, tail0, negT0, rel0, bias0, head1, ..., bias2, out_ref)."""
    out_ref = refs[-1]
    in_refs = refs[:-1]
    num_rel = len(in_refs) // 5

    row = jax.lax.broadcasted_iota(jnp.int32, out_ref.shape, 0)
    col = jax.lax.broadcasted_iota(jnp.int32, out_ref.shape, 1)
    out = jnp.zeros(out_ref.shape, jnp.float32)

    for r in range(num_rel):
        head_ref, tail_ref, negT_ref, rel_ref, bias_ref = in_refs[5 * r: 5 * r + 5]
        head = head_ref[...]    # (B, E)  head_embed(head_idxs)
        tail = tail_ref[...]    # (B, E)  tail_embed(tail_idxs)
        negT = negT_ref[...]    # (E, S)  tail_embed(neg_sample_idx).T
        rel = rel_ref[...]      # (1, E)  relation vector
        bias = bias_ref[...]    # (B, 1)  relation_bias(tail_idxs)

        # example_vec = head_vec + relation_vec
        example = head + rel                                               # (B, E)

        # pos_logits = bmm(tail[:,None,:], example[:,:,None]).squeeze() + bias
        pos_logits = jnp.sum(tail * example, axis=1, keepdims=True) + bias  # (B, 1)
        # pos_loss = -log(sigmoid(x)) = softplus(-x), stable form with log1p
        pos_loss = (jnp.maximum(-pos_logits, 0.0)
                    + jnp.log1p(jnp.exp(-jnp.abs(pos_logits))))             # (B, 1)

        # neg_logits = example @ neg.T + bias   (RHS pre-transposed, K on sublanes)
        # TODO(synk): cast example/negT to bf16 (keep f32 accumulation) once
        # B / num_neg_samples grow to production sizes; negligible at (8x32)@(32x16).
        neg_logits = jnp.dot(example, negT,
                             preferred_element_type=jnp.float32) + bias     # (B, S)
        # neg_loss = sum_S -log(sigmoid(-x)) = sum_S softplus(x)
        neg_loss = jnp.sum(jnp.maximum(neg_logits, 0.0)
                           + jnp.log1p(jnp.exp(-jnp.abs(neg_logits))),
                           axis=1, keepdims=True)                           # (B, 1)

        total = pos_loss + neg_loss                                         # (B, 1)
        batch = total.shape[0]
        loss = jnp.sum(total, axis=(0, 1), keepdims=True) / float(batch)    # (1, 1)

        # sum-of-squares for torch.norm(term) regularization (sqrt done outside)
        h_sq = jnp.sum(head * head, axis=(0, 1), keepdims=True)
        t_sq = jnp.sum(tail * tail, axis=(0, 1), keepdims=True)
        n_sq = jnp.sum(negT * negT, axis=(0, 1), keepdims=True)

        vals = jnp.where(col == 0, loss,
               jnp.where(col == 1, h_sq,
               jnp.where(col == 2, t_sq,
               jnp.where(col == 3, n_sq, 0.0))))
        out = jnp.where(row == r, vals, out)

    out_ref[...] = out


def kg_neg_loss_fused(per_relation_operands):
    """Single-launch fused kg_neg_loss over all relations.

    per_relation_operands: list of R tuples (head (B,E), tail (B,E),
    negT (E,S), rel (1,E), bias (B,1)).
    Returns (R, 4) = [loss, |head|^2, |tail|^2, |neg|^2] per relation.
    """
    flat = []
    for ops in per_relation_operands:
        flat.extend(ops)
    num_rel = len(per_relation_operands)
    assert num_rel <= _OUT_ROWS

    vmem_spec = pl.BlockSpec(memory_space=pltpu.MemorySpace.VMEM)
    out = pl.pallas_call(
        _sci_kernel,
        out_shape=jax.ShapeDtypeStruct((_OUT_ROWS, _OUT_LANES), jnp.float32),
        in_specs=[vmem_spec] * len(flat),
        out_specs=vmem_spec,
    )(*flat)
    return out[:num_rel, :4]                                    # (R, 4)


# ------------------------- parameter construction -------------------------- #
def _xavier_uniform(key, shape):
    fan_out, fan_in = shape[0], shape[1]
    bound = jnp.sqrt(6.0 / (fan_in + fan_out))
    return jax.random.uniform(key, shape, jnp.float32, -bound, bound)


def make_params(key, embed_size, author_size, stock_size, word_size):
    ks = jax.random.split(key, 8)
    params = {
        # entity embeddings: vocab_size + 1 rows (padding row), xavier init,
        # kept at the true embed_size (no lane padding: kernel blocks use the
        # full last dim, so (8,128) divisibility is not required).
        "author": _xavier_uniform(ks[0], (author_size + 1, embed_size)),
        "stock": _xavier_uniform(ks[1], (stock_size + 1, embed_size)),
        "word": _xavier_uniform(ks[2], (word_size + 1, embed_size)),
        # relation vectors [1, embed_size]
        "follow": _xavier_uniform(ks[3], (1, embed_size)),
        "mention": _xavier_uniform(ks[4], (1, embed_size)),
        "described_as": _xavier_uniform(ks[5], (1, embed_size)),
        # relation biases: zeros, [vocab_size + 1, 1]
        "follow_bias": jnp.zeros((stock_size + 1, 1), jnp.float32),
        "mention_bias": jnp.zeros((word_size + 1, 1), jnp.float32),
        "described_as_bias": jnp.zeros((word_size + 1, 1), jnp.float32),
    }
    # _make_distrib: x ** 0.75, normalized.  Precompute the CDF once so the
    # forward pass can inverse-CDF sample (uniform + searchsorted) instead of
    # jax.random.choice(..., p=distrib) re-doing normalize+cumsum every call.
    stock_raw = jax.random.uniform(ks[6], (stock_size,), jnp.float32, 0.1, 1.0)
    word_raw = jax.random.uniform(ks[7], (word_size,), jnp.float32, 0.1, 1.0)
    stock_d = jnp.power(stock_raw, 0.75)
    word_d = jnp.power(word_raw, 0.75)
    stock_d = stock_d / stock_d.sum()
    word_d = word_d / word_d.sum()
    params["stock_cdf"] = jnp.cumsum(stock_d)
    params["word_cdf"] = jnp.cumsum(word_d)
    return params


def _sample_neg(key, cdf, num_samples):
    """torch.multinomial(distrib, n, replacement=True) via inverse-CDF."""
    u = jax.random.uniform(key, (num_samples,), jnp.float32)
    idx = jnp.searchsorted(cdf, u, side="right")
    return jnp.clip(idx, 0, cdf.shape[0] - 1)


# ------------------------------ model forward ------------------------------ #
def sci_forward(params, user_idxs, stock_idxs, word_idxs, sample_key,
                num_neg_samples, l2_lambda):
    # TODO(synk): dynamic boolean-mask filtering of padded (-1) tail indices has
    # no static-shape Pallas equivalent; inputs are assumed all-valid (idx >= 0).
    # TODO(synk): in-kernel scalar-prefetch gathers are not implemented because
    # the three relations read heterogeneous (different-size) embedding tables;
    # row gathers stay in XLA and feed one fused pallas_call.
    relations = [
        ("author", "follow", "stock", user_idxs, stock_idxs, "stock_cdf"),
        ("author", "mention", "word", user_idxs, word_idxs, "word_cdf"),
        ("stock", "described_as", "word", stock_idxs, word_idxs, "word_cdf"),
    ]
    keys = jax.random.split(sample_key, len(relations))

    per_relation = []
    for k, (h_name, r_name, t_name, h_idx, t_idx, cdf_name) in zip(keys, relations):
        head = params[h_name][h_idx].astype(jnp.float32)            # (B, E)
        tail = params[t_name][t_idx].astype(jnp.float32)            # (B, E)
        rel = params[r_name].astype(jnp.float32)                    # (1, E)
        bias = params[r_name + "_bias"][t_idx].astype(jnp.float32)  # (B, 1)
        neg_idx = _sample_neg(k, params[cdf_name], num_neg_samples)
        negT = params[t_name][neg_idx].T.astype(jnp.float32)        # (E, S)
        per_relation.append((head, tail, negT, rel, bias))

    res = kg_neg_loss_fused(per_relation)                           # (3, 4)

    total_loss = jnp.sum(res[:, 0])                                 # sum of 3 losses
    if l2_lambda > 0:
        # torch.norm(term) for head / tail / neg of every relation
        l2_loss = jnp.sum(jnp.sqrt(res[:, 1])
                          + jnp.sqrt(res[:, 2])
                          + jnp.sqrt(res[:, 3]))
        total_loss = total_loss + l2_lambda * l2_loss
    return total_loss


# ---------------------------------- main ------------------------------------ #
if __name__ == "__main__":
    EMBED_SIZE = 32
    BATCH = 8
    NUM_NEG = 16
    AUTHOR_SIZE, STOCK_SIZE, WORD_SIZE = 10, 6, 20
    L2_LAMBDA = 1e-3

    root = jax.random.PRNGKey(0)
    k_params, k_u, k_s, k_w, k_neg = jax.random.split(root, 5)

    params = make_params(k_params, EMBED_SIZE, AUTHOR_SIZE, STOCK_SIZE, WORD_SIZE)
    user_idxs = jax.random.randint(k_u, (BATCH,), 0, AUTHOR_SIZE)
    stock_idxs = jax.random.randint(k_s, (BATCH,), 0, STOCK_SIZE)
    word_idxs = jax.random.randint(k_w, (BATCH,), 0, WORD_SIZE)

    fwd = jax.jit(functools.partial(sci_forward,
                                    num_neg_samples=NUM_NEG,
                                    l2_lambda=L2_LAMBDA))
    loss = fwd(params, user_idxs, stock_idxs, word_idxs, k_neg)
    jax.block_until_ready(loss)
    assert loss.shape == () and jnp.isfinite(loss)
    print("KERNEL_OK")
</pallas_src>

<mosaic_0001>
module attributes {stable_mosaic.version = 11 : i64} {
  func.func @_sci_kernel(%arg0: memref<8x32xf32, #tpu.memory_space<vmem>>, %arg1: memref<8x32xf32, #tpu.memory_space<vmem>>, %arg2: memref<32x16xf32, #tpu.memory_space<vmem>>, %arg3: memref<1x32xf32, #tpu.memory_space<vmem>>, %arg4: memref<8x1xf32, #tpu.memory_space<vmem>>, %arg5: memref<8x32xf32, #tpu.memory_space<vmem>>, %arg6: memref<8x32xf32, #tpu.memory_space<vmem>>, %arg7: memref<32x16xf32, #tpu.memory_space<vmem>>, %arg8: memref<1x32xf32, #tpu.memory_space<vmem>>, %arg9: memref<8x1xf32, #tpu.memory_space<vmem>>, %arg10: memref<8x32xf32, #tpu.memory_space<vmem>>, %arg11: memref<8x32xf32, #tpu.memory_space<vmem>>, %arg12: memref<32x16xf32, #tpu.memory_space<vmem>>, %arg13: memref<1x32xf32, #tpu.memory_space<vmem>>, %arg14: memref<8x1xf32, #tpu.memory_space<vmem>>, %arg15: memref<8x128xf32, #tpu.memory_space<vmem>>) attributes {dimension_semantics = [], scalar_prefetch = 0 : i64, scratch_operands = 0 : i64, tpu.core_type = #tpu.core_type<tc>} {
    %0 = tpu.iota {dimensions = array<i32: 0>} : vector<8x128xi32>
    %1 = tpu.iota {dimensions = array<i32: 1>} : vector<8x128xi32>
    %cst = arith.constant 0.000000e+00 : f32
    %2 = vector.broadcast %cst : f32 to vector<8x128xf32>
    %c0 = arith.constant 0 : index
    %c0_0 = arith.constant 0 : index
    %3 = vector.load %arg0[%c0, %c0_0] : memref<8x32xf32, #tpu.memory_space<vmem>>, vector<8x32xf32>
    %c0_1 = arith.constant 0 : index
    %c0_2 = arith.constant 0 : index
    %4 = vector.load %arg1[%c0_1, %c0_2] : memref<8x32xf32, #tpu.memory_space<vmem>>, vector<8x32xf32>
    %c0_3 = arith.constant 0 : index
    %c0_4 = arith.constant 0 : index
    %5 = vector.load %arg2[%c0_3, %c0_4] : memref<32x16xf32, #tpu.memory_space<vmem>>, vector<32x16xf32>
    %c0_5 = arith.constant 0 : index
    %c0_6 = arith.constant 0 : index
    %6 = vector.load %arg3[%c0_5, %c0_6] : memref<1x32xf32, #tpu.memory_space<vmem>>, vector<1x32xf32>
    %c0_7 = arith.constant 0 : index
    %c0_8 = arith.constant 0 : index
    %7 = vector.load %arg4[%c0_7, %c0_8] : memref<8x1xf32, #tpu.memory_space<vmem>>, vector<8x1xf32>
    %8 = vector.broadcast %6 : vector<1x32xf32> to vector<8x32xf32>
    %9 = arith.addf %3, %8 : vector<8x32xf32>
    %10 = arith.mulf %4, %9 : vector<8x32xf32>
    %cst_9 = arith.constant dense<0.000000e+00> : vector<8xf32>
    %11 = vector.multi_reduction <add>, %10, %cst_9 [1] : vector<8x32xf32> to vector<8xf32>
    %12 = vector.shape_cast %11 : vector<8xf32> to vector<8x1xf32>
    %13 = arith.addf %12, %7 : vector<8x1xf32>
    %cst_10 = arith.constant 0.000000e+00 : f32
    %14 = vector.broadcast %cst_10 : f32 to vector<8x1xf32>
    %15 = arith.subf %14, %13 : vector<8x1xf32>
    %cst_11 = arith.constant 0.000000e+00 : f32
    %16 = vector.broadcast %cst_11 : f32 to vector<8x1xf32>
    %17 = arith.maximumf %15, %16 : vector<8x1xf32>
    %18 = math.absf %13 : vector<8x1xf32>
    %cst_12 = arith.constant 0.000000e+00 : f32
    %19 = vector.broadcast %cst_12 : f32 to vector<8x1xf32>
    %20 = arith.subf %19, %18 : vector<8x1xf32>
    %21 = math.exp %20 : vector<8x1xf32>
    %22 = math.log1p %21 : vector<8x1xf32>
    %23 = arith.addf %17, %22 : vector<8x1xf32>
    %cst_13 = arith.constant dense<0.000000e+00> : vector<8x16xf32>
    %24 = tpu.matmul %9, %5, %cst_13 {dimension_numbers = #tpu.dot_dimension_numbers<[1], [0], [0], [1], [0, 0, 1, 1], [], []>} : vector<8x32xf32>, vector<32x16xf32>, vector<8x16xf32> -> vector<8x16xf32>
    %25 = vector.broadcast %7 : vector<8x1xf32> to vector<8x16xf32>
    %26 = arith.addf %24, %25 : vector<8x16xf32>
    %cst_14 = arith.constant 0.000000e+00 : f32
    %27 = vector.broadcast %cst_14 : f32 to vector<8x16xf32>
    %28 = arith.maximumf %26, %27 : vector<8x16xf32>
    %29 = math.absf %26 : vector<8x16xf32>
    %cst_15 = arith.constant 0.000000e+00 : f32
    %30 = vector.broadcast %cst_15 : f32 to vector<8x16xf32>
    %31 = arith.subf %30, %29 : vector<8x16xf32>
    %32 = math.exp %31 : vector<8x16xf32>
    %33 = math.log1p %32 : vector<8x16xf32>
    %34 = arith.addf %28, %33 : vector<8x16xf32>
    %cst_16 = arith.constant dense<0.000000e+00> : vector<8xf32>
    %35 = vector.multi_reduction <add>, %34, %cst_16 [1] : vector<8x16xf32> to vector<8xf32>
    %36 = vector.shape_cast %35 : vector<8xf32> to vector<8x1xf32>
    %37 = arith.addf %23, %36 : vector<8x1xf32>
    %38 = vector.shape_cast %37 : vector<8x1xf32> to vector<1x8x1xf32>
    %cst_17 = arith.constant dense<0.000000e+00> : vector<1xf32>
    %39 = vector.multi_reduction <add>, %38, %cst_17 [1, 2] : vector<1x8x1xf32> to vector<1xf32>
    %40 = vector.shape_cast %39 : vector<1xf32> to vector<1x1x1xf32>
    %41 = vector.extract %40[0, 0, 0] : f32 from vector<1x1x1xf32>
    %42 = vector.broadcast %41 : f32 to vector<1x1xf32>
    %cst_18 = arith.constant 8.000000e+00 : f32
    %43 = vector.broadcast %cst_18 : f32 to vector<1x1xf32>
    %44 = arith.divf %42, %43 : vector<1x1xf32>
    %45 = arith.mulf %3, %3 : vector<8x32xf32>
    %46 = vector.shape_cast %45 : vector<8x32xf32> to vector<1x8x32xf32>
    %cst_19 = arith.constant dense<0.000000e+00> : vector<1xf32>
    %47 = vector.multi_reduction <add>, %46, %cst_19 [1, 2] : vector<1x8x32xf32> to vector<1xf32>
    %48 = vector.shape_cast %47 : vector<1xf32> to vector<1x1x1xf32>
    %49 = vector.extract %48[0, 0, 0] : f32 from vector<1x1x1xf32>
    %50 = vector.broadcast %49 : f32 to vector<1x1xf32>
    %51 = arith.mulf %4, %4 : vector<8x32xf32>
    %52 = vector.shape_cast %51 : vector<8x32xf32> to vector<1x8x32xf32>
    %cst_20 = arith.constant dense<0.000000e+00> : vector<1xf32>
    %53 = vector.multi_reduction <add>, %52, %cst_20 [1, 2] : vector<1x8x32xf32> to vector<1xf32>
    %54 = vector.shape_cast %53 : vector<1xf32> to vector<1x1x1xf32>
    %55 = vector.extract %54[0, 0, 0] : f32 from vector<1x1x1xf32>
    %56 = vector.broadcast %55 : f32 to vector<1x1xf32>
    %57 = arith.mulf %5, %5 : vector<32x16xf32>
    %58 = vector.shape_cast %57 : vector<32x16xf32> to vector<1x32x16xf32>
    %cst_21 = arith.constant dense<0.000000e+00> : vector<1xf32>
    %59 = vector.multi_reduction <add>, %58, %cst_21 [1, 2] : vector<1x32x16xf32> to vector<1xf32>
    %60 = vector.shape_cast %59 : vector<1xf32> to vector<1x1x1xf32>
    %61 = vector.extract %60[0, 0, 0] : f32 from vector<1x1x1xf32>
    %62 = vector.broadcast %61 : f32 to vector<1x1xf32>
    %c0_i32 = arith.constant 0 : i32
    %63 = vector.broadcast %c0_i32 : i32 to vector<8x128xi32>
    %64 = arith.cmpi eq, %1, %63 : vector<8x128xi32>
    %c1_i32 = arith.constant 1 : i32
    %65 = vector.broadcast %c1_i32 : i32 to vector<8x128xi32>
    %66 = arith.cmpi eq, %1, %65 : vector<8x128xi32>
    %c2_i32 = arith.constant 2 : i32
    %67 = vector.broadcast %c2_i32 : i32 to vector<8x128xi32>
    %68 = arith.cmpi eq, %1, %67 : vector<8x128xi32>
    %c3_i32 = arith.constant 3 : i32
    %69 = vector.broadcast %c3_i32 : i32 to vector<8x128xi32>
    %70 = arith.cmpi eq, %1, %69 : vector<8x128xi32>
    %cst_22 = arith.constant 0.000000e+00 : f32
    %71 = vector.shape_cast %62 : vector<1x1xf32> to vector<1x1xf32>
    %72 = vector.broadcast %71 : vector<1x1xf32> to vector<8x128xf32>
    %73 = vector.broadcast %cst_22 : f32 to vector<8x128xf32>
    %74 = arith.select %70, %72, %73 : vector<8x128xi1>, vector<8x128xf32>
    %75 = vector.shape_cast %56 : vector<1x1xf32> to vector<1x1xf32>
    %76 = vector.broadcast %75 : vector<1x1xf32> to vector<8x128xf32>
    %77 = arith.select %68, %76, %74 : vector<8x128xi1>, vector<8x128xf32>
    %78 = vector.shape_cast %50 : vector<1x1xf32> to vector<1x1xf32>
    %79 = vector.broadcast %78 : vector<1x1xf32> to vector<8x128xf32>
    %80 = arith.select %66, %79, %77 : vector<8x128xi1>, vector<8x128xf32>
    %81 = vector.shape_cast %44 : vector<1x1xf32> to vector<1x1xf32>
    %82 = vector.broadcast %81 : vector<1x1xf32> to vector<8x128xf32>
    %83 = arith.select %64, %82, %80 : vector<8x128xi1>, vector<8x128xf32>
    %c0_i32_23 = arith.constant 0 : i32
    %84 = vector.broadcast %c0_i32_23 : i32 to vector<8x128xi32>
    %85 = arith.cmpi eq, %0, %84 : vector<8x128xi32>
    %86 = arith.select %85, %83, %2 : vector<8x128xi1>, vector<8x128xf32>
    %c0_24 = arith.constant 0 : index
    %c0_25 = arith.constant 0 : index
    %87 = vector.load %arg5[%c0_24, %c0_25] : memref<8x32xf32, #tpu.memory_space<vmem>>, vector<8x32xf32>
    %c0_26 = arith.constant 0 : index
    %c0_27 = arith.constant 0 : index
    %88 = vector.load %arg6[%c0_26, %c0_27] : memref<8x32xf32, #tpu.memory_space<vmem>>, vector<8x32xf32>
    %c0_28 = arith.constant 0 : index
    %c0_29 = arith.constant 0 : index
    %89 = vector.load %arg7[%c0_28, %c0_29] : memref<32x16xf32, #tpu.memory_space<vmem>>, vector<32x16xf32>
    %c0_30 = arith.constant 0 : index
    %c0_31 = arith.constant 0 : index
    %90 = vector.load %arg8[%c0_30, %c0_31] : memref<1x32xf32, #tpu.memory_space<vmem>>, vector<1x32xf32>
    %c0_32 = arith.constant 0 : index
    %c0_33 = arith.constant 0 : index
    %91 = vector.load %arg9[%c0_32, %c0_33] : memref<8x1xf32, #tpu.memory_space<vmem>>, vector<8x1xf32>
    %92 = vector.broadcast %90 : vector<1x32xf32> to vector<8x32xf32>
    %93 = arith.addf %87, %92 : vector<8x32xf32>
    %94 = arith.mulf %88, %93 : vector<8x32xf32>
    %cst_34 = arith.constant dense<0.000000e+00> : vector<8xf32>
    %95 = vector.multi_reduction <add>, %94, %cst_34 [1] : vector<8x32xf32> to vector<8xf32>
    %96 = vector.shape_cast %95 : vector<8xf32> to vector<8x1xf32>
    %97 = arith.addf %96, %91 : vector<8x1xf32>
    %cst_35 = arith.constant 0.000000e+00 : f32
    %98 = vector.broadcast %cst_35 : f32 to vector<8x1xf32>
    %99 = arith.subf %98, %97 : vector<8x1xf32>
    %cst_36 = arith.constant 0.000000e+00 : f32
    %100 = vector.broadcast %cst_36 : f32 to vector<8x1xf32>
    %101 = arith.maximumf %99, %100 : vector<8x1xf32>
    %102 = math.absf %97 : vector<8x1xf32>
    %cst_37 = arith.constant 0.000000e+00 : f32
    %103 = vector.broadcast %cst_37 : f32 to vector<8x1xf32>
    %104 = arith.subf %103, %102 : vector<8x1xf32>
    %105 = math.exp %104 : vector<8x1xf32>
    %106 = math.log1p %105 : vector<8x1xf32>
    %107 = arith.addf %101, %106 : vector<8x1xf32>
    %cst_38 = arith.constant dense<0.000000e+00> : vector<8x16xf32>
    %108 = tpu.matmul %93, %89, %cst_38 {dimension_numbers = #tpu.dot_dimension_numbers<[1], [0], [0], [1], [0, 0, 1, 1], [], []>} : vector<8x32xf32>, vector<32x16xf32>, vector<8x16xf32> -> vector<8x16xf32>
    %109 = vector.broadcast %91 : vector<8x1xf32> to vector<8x16xf32>
    %110 = arith.addf %108, %109 : vector<8x16xf32>
    %cst_39 = arith.constant 0.000000e+00 : f32
    %111 = vector.broadcast %cst_39 : f32 to vector<8x16xf32>
    %112 = arith.maximumf %110, %111 : vector<8x16xf32>
    %113 = math.absf %110 : vector<8x16xf32>
    %cst_40 = arith.constant 0.000000e+00 : f32
    %114 = vector.broadcast %cst_40 : f32 to vector<8x16xf32>
    %115 = arith.subf %114, %113 : vector<8x16xf32>
    %116 = math.exp %115 : vector<8x16xf32>
    %117 = math.log1p %116 : vector<8x16xf32>
    %118 = arith.addf %112, %117 : vector<8x16xf32>
    %cst_41 = arith.constant dense<0.000000e+00> : vector<8xf32>
    %119 = vector.multi_reduction <add>, %118, %cst_41 [1] : vector<8x16xf32> to vector<8xf32>
    %120 = vector.shape_cast %119 : vector<8xf32> to vector<8x1xf32>
    %121 = arith.addf %107, %120 : vector<8x1xf32>
    %122 = vector.shape_cast %121 : vector<8x1xf32> to vector<1x8x1xf32>
    %cst_42 = arith.constant dense<0.000000e+00> : vector<1xf32>
    %123 = vector.multi_reduction <add>, %122, %cst_42 [1, 2] : vector<1x8x1xf32> to vector<1xf32>
    %124 = vector.shape_cast %123 : vector<1xf32> to vector<1x1x1xf32>
    %125 = vector.extract %124[0, 0, 0] : f32 from vector<1x1x1xf32>
    %126 = vector.broadcast %125 : f32 to vector<1x1xf32>
    %cst_43 = arith.constant 8.000000e+00 : f32
    %127 = vector.broadcast %cst_43 : f32 to vector<1x1xf32>
    %128 = arith.divf %126, %127 : vector<1x1xf32>
    %129 = arith.mulf %87, %87 : vector<8x32xf32>
    %130 = vector.shape_cast %129 : vector<8x32xf32> to vector<1x8x32xf32>
    %cst_44 = arith.constant dense<0.000000e+00> : vector<1xf32>
    %131 = vector.multi_reduction <add>, %130, %cst_44 [1, 2] : vector<1x8x32xf32> to vector<1xf32>
    %132 = vector.shape_cast %131 : vector<1xf32> to vector<1x1x1xf32>
    %133 = vector.extract %132[0, 0, 0] : f32 from vector<1x1x1xf32>
    %134 = vector.broadcast %133 : f32 to vector<1x1xf32>
    %135 = arith.mulf %88, %88 : vector<8x32xf32>
    %136 = vector.shape_cast %135 : vector<8x32xf32> to vector<1x8x32xf32>
    %cst_45 = arith.constant dense<0.000000e+00> : vector<1xf32>
    %137 = vector.multi_reduction <add>, %136, %cst_45 [1, 2] : vector<1x8x32xf32> to vector<1xf32>
    %138 = vector.shape_cast %137 : vector<1xf32> to vector<1x1x1xf32>
    %139 = vector.extract %138[0, 0, 0] : f32 from vector<1x1x1xf32>
    %140 = vector.broadcast %139 : f32 to vector<1x1xf32>
    %141 = arith.mulf %89, %89 : vector<32x16xf32>
    %142 = vector.shape_cast %141 : vector<32x16xf32> to vector<1x32x16xf32>
    %cst_46 = arith.constant dense<0.000000e+00> : vector<1xf32>
    %143 = vector.multi_reduction <add>, %142, %cst_46 [1, 2] : vector<1x32x16xf32> to vector<1xf32>
    %144 = vector.shape_cast %143 : vector<1xf32> to vector<1x1x1xf32>
    %145 = vector.extract %144[0, 0, 0] : f32 from vector<1x1x1xf32>
    %146 = vector.broadcast %145 : f32 to vector<1x1xf32>
    %c0_i32_47 = arith.constant 0 : i32
    %147 = vector.broadcast %c0_i32_47 : i32 to vector<8x128xi32>
    %148 = arith.cmpi eq, %1, %147 : vector<8x128xi32>
    %c1_i32_48 = arith.constant 1 : i32
    %149 = vector.broadcast %c1_i32_48 : i32 to vector<8x128xi32>
    %150 = arith.cmpi eq, %1, %149 : vector<8x128xi32>
    %c2_i32_49 = arith.constant 2 : i32
    %151 = vector.broadcast %c2_i32_49 : i32 to vector<8x128xi32>
    %152 = arith.cmpi eq, %1, %151 : vector<8x128xi32>
    %c3_i32_50 = arith.constant 3 : i32
    %153 = vector.broadcast %c3_i32_50 : i32 to vector<8x128xi32>
    %154 = arith.cmpi eq, %1, %153 : vector<8x128xi32>
    %cst_51 = arith.constant 0.000000e+00 : f32
    %155 = vector.shape_cast %146 : vector<1x1xf32> to vector<1x1xf32>
    %156 = vector.broadcast %155 : vector<1x1xf32> to vector<8x128xf32>
    %157 = vector.broadcast %cst_51 : f32 to vector<8x128xf32>
    %158 = arith.select %154, %156, %157 : vector<8x128xi1>, vector<8x128xf32>
    %159 = vector.shape_cast %140 : vector<1x1xf32> to vector<1x1xf32>
    %160 = vector.broadcast %159 : vector<1x1xf32> to vector<8x128xf32>
    %161 = arith.select %152, %160, %158 : vector<8x128xi1>, vector<8x128xf32>
    %162 = vector.shape_cast %134 : vector<1x1xf32> to vector<1x1xf32>
    %163 = vector.broadcast %162 : vector<1x1xf32> to vector<8x128xf32>
    %164 = arith.select %150, %163, %161 : vector<8x128xi1>, vector<8x128xf32>
    %165 = vector.shape_cast %128 : vector<1x1xf32> to vector<1x1xf32>
    %166 = vector.broadcast %165 : vector<1x1xf32> to vector<8x128xf32>
    %167 = arith.select %148, %166, %164 : vector<8x128xi1>, vector<8x128xf32>
    %c1_i32_52 = arith.constant 1 : i32
    %168 = vector.broadcast %c1_i32_52 : i32 to vector<8x128xi32>
    %169 = arith.cmpi eq, %0, %168 : vector<8x128xi32>
    %170 = arith.select %169, %167, %86 : vector<8x128xi1>, vector<8x128xf32>
    %c0_53 = arith.constant 0 : index
    %c0_54 = arith.constant 0 : index
    %171 = vector.load %arg10[%c0_53, %c0_54] : memref<8x32xf32, #tpu.memory_space<vmem>>, vector<8x32xf32>
    %c0_55 = arith.constant 0 : index
    %c0_56 = arith.constant 0 : index
    %172 = vector.load %arg11[%c0_55, %c0_56] : memref<8x32xf32, #tpu.memory_space<vmem>>, vector<8x32xf32>
    %c0_57 = arith.constant 0 : index
    %c0_58 = arith.constant 0 : index
    %173 = vector.load %arg12[%c0_57, %c0_58] : memref<32x16xf32, #tpu.memory_space<vmem>>, vector<32x16xf32>
    %c0_59 = arith.constant 0 : index
    %c0_60 = arith.constant 0 : index
    %174 = vector.load %arg13[%c0_59, %c0_60] : memref<1x32xf32, #tpu.memory_space<vmem>>, vector<1x32xf32>
    %c0_61 = arith.constant 0 : index
    %c0_62 = arith.constant 0 : index
    %175 = vector.load %arg14[%c0_61, %c0_62] : memref<8x1xf32, #tpu.memory_space<vmem>>, vector<8x1xf32>
    %176 = vector.broadcast %174 : vector<1x32xf32> to vector<8x32xf32>
    %177 = arith.addf %171, %176 : vector<8x32xf32>
    %178 = arith.mulf %172, %177 : vector<8x32xf32>
    %cst_63 = arith.constant dense<0.000000e+00> : vector<8xf32>
    %179 = vector.multi_reduction <add>, %178, %cst_63 [1] : vector<8x32xf32> to vector<8xf32>
    %180 = vector.shape_cast %179 : vector<8xf32> to vector<8x1xf32>
    %181 = arith.addf %180, %175 : vector<8x1xf32>
    %cst_64 = arith.constant 0.000000e+00 : f32
    %182 = vector.broadcast %cst_64 : f32 to vector<8x1xf32>
    %183 = arith.subf %182, %181 : vector<8x1xf32>
    %cst_65 = arith.constant 0.000000e+00 : f32
    %184 = vector.broadcast %cst_65 : f32 to vector<8x1xf32>
    %185 = arith.maximumf %183, %184 : vector<8x1xf32>
    %186 = math.absf %181 : vector<8x1xf32>
    %cst_66 = arith.constant 0.000000e+00 : f32
    %187 = vector.broadcast %cst_66 : f32 to vector<8x1xf32>
    %188 = arith.subf %187, %186 : vector<8x1xf32>
    %189 = math.exp %188 : vector<8x1xf32>
    %190 = math.log1p %189 : vector<8x1xf32>
    %191 = arith.addf %185, %190 : vector<8x1xf32>
    %cst_67 = arith.constant dense<0.000000e+00> : vector<8x16xf32>
    %192 = tpu.matmul %177, %173, %cst_67 {dimension_numbers = #tpu.dot_dimension_numbers<[1], [0], [0], [1], [0, 0, 1, 1], [], []>} : vector<8x32xf32>, vector<32x16xf32>, vector<8x16xf32> -> vector<8x16xf32>
    %193 = vector.broadcast %175 : vector<8x1xf32> to vector<8x16xf32>
    %194 = arith.addf %192, %193 : vector<8x16xf32>
    %cst_68 = arith.constant 0.000000e+00 : f32
    %195 = vector.broadcast %cst_68 : f32 to vector<8x16xf32>
    %196 = arith.maximumf %194, %195 : vector<8x16xf32>
    %197 = math.absf %194 : vector<8x16xf32>
    %cst_69 = arith.constant 0.000000e+00 : f32
    %198 = vector.broadcast %cst_69 : f32 to vector<8x16xf32>
    %199 = arith.subf %198, %197 : vector<8x16xf32>
    %200 = math.exp %199 : vector<8x16xf32>
    %201 = math.log1p %200 : vector<8x16xf32>
    %202 = arith.addf %196, %201 : vector<8x16xf32>
    %cst_70 = arith.constant dense<0.000000e+00> : vector<8xf32>
    %203 = vector.multi_reduction <add>, %202, %cst_70 [1] : vector<8x16xf32> to vector<8xf32>
    %204 = vector.shape_cast %203 : vector<8xf32> to vector<8x1xf32>
    %205 = arith.addf %191, %204 : vector<8x1xf32>
    %206 = vector.shape_cast %205 : vector<8x1xf32> to vector<1x8x1xf32>
    %cst_71 = arith.constant dense<0.000000e+00> : vector<1xf32>
    %207 = vector.multi_reduction <add>, %206, %cst_71 [1, 2] : vector<1x8x1xf32> to vector<1xf32>
    %208 = vector.shape_cast %207 : vector<1xf32> to vector<1x1x1xf32>
    %209 = vector.extract %208[0, 0, 0] : f32 from vector<1x1x1xf32>
    %210 = vector.broadcast %209 : f32 to vector<1x1xf32>
    %cst_72 = arith.constant 8.000000e+00 : f32
    %211 = vector.broadcast %cst_72 : f32 to vector<1x1xf32>
    %212 = arith.divf %210, %211 : vector<1x1xf32>
    %213 = arith.mulf %171, %171 : vector<8x32xf32>
    %214 = vector.shape_cast %213 : vector<8x32xf32> to vector<1x8x32xf32>
    %cst_73 = arith.constant dense<0.000000e+00> : vector<1xf32>
    %215 = vector.multi_reduction <add>, %214, %cst_73 [1, 2] : vector<1x8x32xf32> to vector<1xf32>
    %216 = vector.shape_cast %215 : vector<1xf32> to vector<1x1x1xf32>
    %217 = vector.extract %216[0, 0, 0] : f32 from vector<1x1x1xf32>
    %218 = vector.broadcast %217 : f32 to vector<1x1xf32>
    %219 = arith.mulf %172, %172 : vector<8x32xf32>
    %220 = vector.shape_cast %219 : vector<8x32xf32> to vector<1x8x32xf32>
    %cst_74 = arith.constant dense<0.000000e+00> : vector<1xf32>
    %221 = vector.multi_reduction <add>, %220, %cst_74 [1, 2] : vector<1x8x32xf32> to vector<1xf32>
    %222 = vector.shape_cast %221 : vector<1xf32> to vector<1x1x1xf32>
    %223 = vector.extract %222[0, 0, 0] : f32 from vector<1x1x1xf32>
    %224 = vector.broadcast %223 : f32 to vector<1x1xf32>
    %225 = arith.mulf %173, %173 : vector<32x16xf32>
    %226 = vector.shape_cast %225 : vector<32x16xf32> to vector<1x32x16xf32>
    %cst_75 = arith.constant dense<0.000000e+00> : vector<1xf32>
    %227 = vector.multi_reduction <add>, %226, %cst_75 [1, 2] : vector<1x32x16xf32> to vector<1xf32>
    %228 = vector.shape_cast %227 : vector<1xf32> to vector<1x1x1xf32>
    %229 = vector.extract %228[0, 0, 0] : f32 from vector<1x1x1xf32>
    %230 = vector.broadcast %229 : f32 to vector<1x1xf32>
    %c0_i32_76 = arith.constant 0 : i32
    %231 = vector.broadcast %c0_i32_76 : i32 to vector<8x128xi32>
    %232 = arith.cmpi eq, %1, %231 : vector<8x128xi32>
    %c1_i32_77 = arith.constant 1 : i32
    %233 = vector.broadcast %c1_i32_77 : i32 to vector<8x128xi32>
    %234 = arith.cmpi eq, %1, %233 : vector<8x128xi32>
    %c2_i32_78 = arith.constant 2 : i32
    %235 = vector.broadcast %c2_i32_78 : i32 to vector<8x128xi32>
    %236 = arith.cmpi eq, %1, %235 : vector<8x128xi32>
    %c3_i32_79 = arith.constant 3 : i32
    %237 = vector.broadcast %c3_i32_79 : i32 to vector<8x128xi32>
    %238 = arith.cmpi eq, %1, %237 : vector<8x128xi32>
    %cst_80 = arith.constant 0.000000e+00 : f32
    %239 = vector.shape_cast %230 : vector<1x1xf32> to vector<1x1xf32>
    %240 = vector.broadcast %239 : vector<1x1xf32> to vector<8x128xf32>
    %241 = vector.broadcast %cst_80 : f32 to vector<8x128xf32>
    %242 = arith.select %238, %240, %241 : vector<8x128xi1>, vector<8x128xf32>
    %243 = vector.shape_cast %224 : vector<1x1xf32> to vector<1x1xf32>
    %244 = vector.broadcast %243 : vector<1x1xf32> to vector<8x128xf32>
    %245 = arith.select %236, %244, %242 : vector<8x128xi1>, vector<8x128xf32>
    %246 = vector.shape_cast %218 : vector<1x1xf32> to vector<1x1xf32>
    %247 = vector.broadcast %246 : vector<1x1xf32> to vector<8x128xf32>
    %248 = arith.select %234, %247, %245 : vector<8x128xi1>, vector<8x128xf32>
    %249 = vector.shape_cast %212 : vector<1x1xf32> to vector<1x1xf32>
    %250 = vector.broadcast %249 : vector<1x1xf32> to vector<8x128xf32>
    %251 = arith.select %232, %250, %248 : vector<8x128xi1>, vector<8x128xf32>
    %c2_i32_81 = arith.constant 2 : i32
    %252 = vector.broadcast %c2_i32_81 : i32 to vector<8x128xi32>
    %253 = arith.cmpi eq, %0, %252 : vector<8x128xi32>
    %254 = arith.select %253, %251, %170 : vector<8x128xi1>, vector<8x128xf32>
    %c0_82 = arith.constant 0 : index
    %c0_83 = arith.constant 0 : index
    %255 = vector.load %arg15[%c0_82, %c0_83] : memref<8x128xf32, #tpu.memory_space<vmem>>, vector<8x128xf32>
    tpu.vector_store %arg15[%c0_82, %c0_83], %254 {strides = array<i32>} : memref<8x128xf32, #tpu.memory_space<vmem>>, vector<8x128xf32>,
    return
  }
}

</mosaic_0001>

<bundles_post_ra>
// kernel: custom-call.4
= control target key start
LH: loop header
LB: loop body
LE: loop exit
PB: predicated region body
PF: predicated region fallthrough
CT: control target
= control target key end

     0   :  { %s6_s0 = inlined_call_operand.vmem [shape: u32[16], index: 0, kind: output, shape index: {}]  }

// kernel: sci_forward.3
= control target key start
LH: loop header
LB: loop body
LE: loop exit
PB: predicated region body
PF: predicated region fallthrough
CT: control target
= control target key end

     0   :  { %v762_v0 = vmov 0.0   ;;  %vm70_vm0 = vcmask 261120   ;;  %vm763_vm1 = vmmov 0   ;;  %v764_v20 = vmov 0   ;;  %s1082_s2 = inlined_call_operand.vmem [shape: f32[32,16], index: 2, kind: input, shape index: {}]   ;;  %s1083_s7 = inlined_call_operand.vmem [shape: f32[32,16], index: 7, kind: input, shape index: {}]   ;;  %s1084_s0 = inlined_call_operand.vmem [shape: f32[8,32], index: 0, kind: input, shape index: {}, may-alias: {0,5}]   ;;  %s1085_s3 = inlined_call_operand.vmem [shape: f32[1,32], index: 3, kind: input, shape index: {}]   ;;  %s1086_s5 = inlined_call_operand.vmem [shape: f32[8,32], index: 5, kind: input, shape index: {}, may-alias: {0,5}]   ;;  %s1087_s8 = inlined_call_operand.vmem [shape: f32[1,32], index: 8, kind: input, shape index: {}]   ;;  %s1088_s12 = inlined_call_operand.vmem [shape: f32[32,16], index: 12, kind: input, shape index: {}]   ;;  %s1089_s4 = inlined_call_operand.vmem [shape: f32[8,1], index: 4, kind: input, shape index: {}]   ;;  %s1090_s10 = inlined_call_operand.vmem [shape: f32[8,32], index: 10, kind: input, shape index: {}, may-alias: {1,10}]   ;;  %s1091_s13 = inlined_call_operand.vmem [shape: f32[1,32], index: 13, kind: input, shape index: {}]   ;;  %s1092_s14 = inlined_call_operand.vmem [shape: f32[8,1], index: 14, kind: input, shape index: {}]   ;;  %s1093_s9 = inlined_call_operand.vmem [shape: f32[8,1], index: 9, kind: input, shape index: {}]   ;;  %s1094_s6 = inlined_call_operand.vmem [shape: f32[8,32], index: 6, kind: input, shape index: {}, may-alias: {6,11}]   ;;  %s1095_s1 = inlined_call_operand.vmem [shape: f32[8,32], index: 1, kind: input, shape index: {}, may-alias: {1,10}]   ;;  %s1096_s11 = inlined_call_operand.vmem [shape: f32[8,32], index: 11, kind: input, shape index: {}, may-alias: {6,11}]   ;;  %s1097_s15 = inlined_call_operand.vmem [shape: f32[8,128], index: 15, kind: output, shape index: {}]  }
   0x1   :  { %676 = vmatprep.subr.mxu0 %v762_v0  ;;  %687 = vmatprep.subr.mxu1 %v762_v0  ;;  %v850_v1 = vld [vmem:[%s1082_s2 + $0x18] sm:$0xff]  ;;  %v860_v3 = vld [vmem:[%s1082_s2 + $0x10] sm:$0xff]  ;;  %v874_v5 = vld [vmem:[%s1082_s2 + $0x8] sm:$0xff]  ;;  %vm184_vm2 = vcmask 130048   ;;  %vm189_vm8 = vcmask 7168  }
   0x2   :  { %v855_v2 = vld [vmem:[%s1083_s7 + $0x18] sm:$0xff]  ;;  %677 = vmatpush3.msra.mxu0 %v850_v1  ;;  %v867_v4 = vld [vmem:[%s1083_s7 + $0x10] sm:$0xff]  ;;  %v879_v6 = vld [vmem:[%s1083_s7 + $0x8] sm:$0xff]  ;;  %684 = vmatprep.mubr.msk.f32.mxu0 %vm763_vm1, %v762_v0  ;;  %v226_v35 = vmul.f32 %v874_v5, %v874_v5  ;;  %v227_v37 = vmul.f32 %v860_v3, %v860_v3  ;;  %v228_v38 = vmul.f32 %v850_v1, %v850_v1 }
   0x3   :  { %688 = vmatpush3.msra.mxu1 %v855_v2  ;;  %678 = vmatprep.subr.mxu0 %v762_v0  ;;  %v884_v7 = vld [vmem:[%s1084_s0] sm:$0xff]  ;;  %v924_v15 = vld [vmem:[%s1088_s12 + $0x18] sm:$0xff]  ;;  %v937_v17 = vld [vmem:[%s1088_s12 + $0x10] sm:$0xff] }
   0x4   :  { %689 = vmatprep.subr.mxu1 %v762_v0  ;;  %679 = vmatpush3.msra.mxu0 %v860_v3  ;;  %v655_v8 = vld [vmem:[%s1085_s3] ss:$0 sm:$0xff]  ;;  %v958_v22 = vld [vmem:[%s1088_s12 + $0x8] sm:$0xff]  ;;  %v230_v39 = vsel %vm184_vm2, %v226_v35, 0.0  ;;  %v232_v42 = vsel %vm184_vm2, %v227_v37, 0.0  ;;  %v234_v43 = vsel %vm184_vm2, %v228_v38, 0.0 }
   0x5   :  { %690 = vmatpush3.msra.mxu1 %v867_v4  ;;  %v894_v9 = vld [vmem:[%s1086_s5] sm:$0xff]  ;;  %680 = vmatprep.subr.mxu0 %v762_v0  ;;  %v68_v13 = vadd.f32 %v655_v8, %v884_v7 }
   0x6   :  { %v657_v10 = vld [vmem:[%s1087_s8] ss:$0 sm:$0xff]  ;;  %691 = vmatprep.subr.mxu1 %v762_v0  ;;  %681 = vmatpush3.msra.mxu0 %v874_v5 }
   0x7   :  { %v904_v11 = vld [vmem:[%s1082_s2] sm:$0xff]  ;;  %692 = vmatpush3.msra.mxu1 %v879_v6  ;;  %v272_v14 = vadd.f32 %v657_v10, %v894_v9  ;;  %682 = vmatprep.subr.mxu0 %v762_v0 }
   0x8   :  { %v911_v12 = vld [vmem:[%s1083_s7] sm:$0xff]  ;;  %693 = vmatprep.subr.mxu1 %v762_v0  ;;  %683 = vmatpush3.msra.mxu0 %v904_v11  ;;  %v225_v36 = vmul.f32 %v904_v11, %v904_v11 }
   0x9   :  { %694 = vmatpush3.msra.mxu1 %v911_v12  ;;  %695 = vmatprep.mubr.msk.f32.mxu1 %vm763_vm1, %v762_v0  ;;  %v931_v16 = vld [vmem:[%s1089_s4] sm:$0xff] }
   0xa   :  { %685 = vmatmul.mubr.msk.f32.vlgmr.msra.gmra.mxu0 %vm70_vm0, %v68_v13  ;;  %696 = vmatmul.mubr.msk.f32.vlgmr.msra.gmra.mxu1 %vm70_vm0, %v272_v14  ;;  %v944_v18 = vld [vmem:[%s1090_s10] sm:$0xff]  ;;  %v229_v40 = vsel %vm184_vm2, %v225_v36, 0.0 }
   0xb   :  { %698 = vmatprep.subr.mxu0 %v762_v0  ;;  %706 = vmatprep.mubr.msk.f32.mxu0 %vm763_vm1, %v762_v0  ;;  %v659_v19 = vld [vmem:[%s1091_s13] ss:$0 sm:$0xff]  ;;  %v231_v41 = vadd.f32 %v230_v39, %v229_v40 }
   0xc   :  { %699 = vmatpush3.msra.mxu0 %v924_v15  ;;  %736 = vset.pattern.permute.xlu0 %v764_v20  ;;  %v952_v21 = vld [vmem:[%s1092_s14] sm:$0xff]  ;;  %v468_v25 = vadd.f32 %v659_v19, %v944_v18 }
   0xd   :  { %700 = vmatprep.subr.mxu0 %v762_v0  ;;  %93 = vperm.xlu0 %736, %v931_v16   ;;  %v965_v23 = vld [vmem:[%s1093_s9] sm:$0xff]  ;;  %v233_v44 = vadd.f32 %v232_v42, %v231_v41 }
   0xe   :  { %701 = vmatpush3.msra.mxu0 %v937_v17  ;;  %737 = vset.pattern.permute.xlu1 %v764_v20  ;;  %v971_v24 = vld [vmem:[%s1088_s12] sm:$0xff] }
   0xf   :  { %702 = vmatprep.subr.mxu0 %v762_v0  ;;  %492 = vperm.xlu1 %737, %v952_v21   ;;  %v983_v26 = vld [vmem:[%s1094_s6] sm:$0xff]  ;;  %v1013_v45 = vadd.f32 %v234_v43, %v233_v44 }
  0x10   :  { %703 = vmatpush3.msra.mxu0 %v958_v22  ;;  %v988_v27 = vld [vmem:[%s1095_s1] sm:$0xff]  ;;  %v273_v28 = vmul.f32 %v272_v14, %v983_v26 }
  0x11   :  { %704 = vmatprep.subr.mxu0 %v762_v0  ;;  %296 = vperm.xlu0 %736, %v965_v23   ;;  %v994_v29 = vld [vmem:[%s1096_s11] sm:$0xff]  ;;  %v69_v30 = vmul.f32 %v68_v13, %v988_v27  ;;  %v214_v44 = vmul.f32 %v988_v27, %v988_v27  ;;  %v414_v27 = vmul.f32 %v983_v26, %v983_v26 }
  0x12   :  { %705 = vmatpush3.msra.mxu0 %v971_v24  ;;  %v274_v31 = vsel %vm70_vm0, %v273_v28, 0.0  ;;  %v469_v32 = vmul.f32 %v468_v25, %v994_v29 }
  0x13   :  { %707 = vmatmul.mubr.msk.f32.vlgmr.msra.gmra.mxu0 %vm70_vm0, %v468_v25  ;;  %v71_v33 = vsel %vm70_vm0, %v69_v30, 0.0 }
  0x14   :  { %v470_v34 = vsel %vm70_vm0, %v469_v32, 0.0 }
  0x30   :  { %275 = vadd.xlane.f32.xlu0 %v274_v31 }
  0x33   :  { %72 = vadd.xlane.f32.xlu1 %v71_v33 }
  0x34   :  { %471 = vadd.xlane.f32.xlu0 %v470_v34 }
  0x88   :  { %v94_v46 = vpop.permute.xlu0 %93 }
  0x8a   :  { %v493_v60 = vpop.permute.xlu1 %492 }
  0x8c   :  { %v297_v47 = vpop.permute.xlu0 %296 }
  0xca   :  { %v368_v48 = vpop.f32.mrf.mxu1  ;;  %v165_v49 = vpop.f32.mrf.mxu0 }
  0xcb   :  { %v369_v50 = vadd.f32 %v368_v48, %v297_v47  ;;  %v166_v51 = vadd.f32 %v165_v49, %v94_v46  ;;  %v426_v47 = vmul.f32 %v879_v6, %v879_v6  ;;  %v425_v48 = vmul.f32 %v911_v12, %v911_v12 }
  0xcc   :  { %v686_v52 = vpop.f32.mrf.mxu0  ;;  %v697_v53 = vpop.f32.mrf.mxu1  ;;  %v427_v6 = vmul.f32 %v867_v4, %v867_v4 }
  0xcd   :  { %v373_v54 = vand.u32 2147483647, %v369_v50  ;;  %v170_v55 = vand.u32 2147483647, %v166_v51  ;;  %v372_v34 = vmax.f32 %v369_v50, 0.0  ;;  %v169_v40 = vmax.f32 %v166_v51, 0.0 }
  0xce   :  { %v215_v53 = vsel %vm70_vm0, %v214_v44, 0.0  ;;  %v429_v12 = vsel %vm184_vm2, %v425_v48, 0.0 }
  0xcf   :  { %v374_v56 = vsub.f32 0.0, %v373_v54  ;;  %v171_v57 = vsub.f32 0.0, %v170_v55  ;;  %v430_v55 = vsel %vm184_vm2, %v426_v47, 0.0 }
  0xd0   :  { %v431_v4 = vadd.f32 %v430_v55, %v429_v12 }
  0xd1   :  { %v375_v58 = vmul.f32 1.442695, %v374_v56  ;;  %v172_v59 = vmul.f32 1.442695, %v171_v57 }
  0xd3   :  { %738 = vpow2.f32 %v375_v58  ;;  %v564_v61 = vpop.f32.mrf.mxu0 }
  0xd4   :  { %740 = vpow2.f32 %v172_v59  ;;  %v565_v62 = vadd.f32 %v564_v61, %v493_v60  ;;  %v428_v59 = vmul.f32 %v855_v2, %v855_v2  ;;  %v415_v61 = vsel %vm70_vm0, %v414_v27, 0.0 }
  0xd5   :  { %v708_v63 = vpop.f32.mrf.mxu0  ;;  %v621_v2 = vmul.f32 %v971_v24, %v971_v24 }
  0xd6   :  { %v569_v0 = vand.u32 2147483647, %v565_v62  ;;  %v568_v58 = vmax.f32 %v565_v62, 0.0  ;;  %v203_v63 = vmul.f32 %v884_v7, %v884_v7  ;;  %v622_v62 = vmul.f32 %v958_v22, %v958_v22 }
  0xd7   :  { %v623_v7 = vmul.f32 %v937_v17, %v937_v17  ;;  %v403_v22 = vmul.f32 %v894_v9, %v894_v9  ;;  %v599_v17 = vmul.f32 %v944_v18, %v944_v18 }
  0xd8   :  { %v570_v1 = vsub.f32 0.0, %v569_v0  ;;  %v432_v0 = vsel %vm184_vm2, %v427_v6, 0.0 }
  0xd9   :  { %v628_v24 = vsel %vm184_vm2, %v623_v7, 0.0 }
  0xda   :  { %v571_v3 = vmul.f32 1.442695, %v570_v1 }
  0xdc   :  { %742 = vpow2.f32 %v571_v3  ;;  %v433_v3 = vadd.f32 %v432_v0, %v431_v4 }
  0xe0   :  { %v739_v5 = vpop.eup %738 }
  0xe1   :  { %v741_v8 = vpop.eup %740  ;;  %v377_v10 = vadd.f32 1.0, %v739_v5  ;;  %v380_v14 = vmul.f32 -0.5, %v739_v5  ;;  %v383_v28 = vand.u32 2147483647, %v739_v5 }
  0xe2   :  { %v174_v11 = vadd.f32 1.0, %v741_v8  ;;  %v177_v19 = vmul.f32 -0.5, %v741_v8  ;;  %v180_v31 = vand.u32 2147483647, %v741_v8 }
  0xe3   :  { %744 = vlog2.f32 %v377_v10  ;;  %v381_v25 = vadd.f32 1.0, %v380_v14  ;;  %vm384_vm3 = vcmp.lt.f32.partialorder %v383_v28, 0.0004427343  ;;  %v600_v28 = vsel %vm70_vm0, %v599_v17, 0.0 }
  0xe4   :  { %746 = vlog2.f32 %v174_v11  ;;  %v178_v30 = vadd.f32 1.0, %v177_v19  ;;  %vm181_vm4 = vcmp.lt.f32.partialorder %v180_v31, 0.0004427343  ;;  %v625_v11 = vsel %vm184_vm2, %v621_v2, 0.0  ;;  %v73_v31 = vpop.xlane.xlu1 %72 }
  0xe5   :  { %v382_v36 = vmul.f32 %v739_v5, %v381_v25  ;;  %v434_v5 = vsel %vm184_vm2, %v428_v59, 0.0  ;;  %v624_v25 = vmul.f32 %v924_v15, %v924_v15 }
  0xe6   :  { %v179_v38 = vmul.f32 %v741_v8, %v178_v30  ;;  %v204_v8 = vsel %vm70_vm0, %v203_v63, 0.0  ;;  %v435_v10 = vadd.f32 %v434_v5, %v433_v3 }
  0xe7   :  { %v630_v9 = vsel %vm184_vm2, %v624_v25, 0.0  ;;  %v610_v25 = vmul.f32 %v994_v29, %v994_v29 }
  0xe9   :  { %v743_v13 = vpop.eup %742 }
  0xea   :  { %v573_v20 = vadd.f32 1.0, %v743_v13  ;;  %v576_v39 = vmul.f32 -0.5, %v743_v13  ;;  %v579_v52 = vand.u32 2147483647, %v743_v13 }
  0xec   :  { %748 = vlog2.f32 %v573_v20  ;;  %v577_v50 = vadd.f32 1.0, %v576_v39  ;;  %vm580_vm5 = vcmp.lt.f32.partialorder %v579_v52, 0.0004427343  ;;  %v404_v20 = vsel %vm70_vm0, %v403_v22, 0.0 }
  0xee   :  { %v578_v57 = vmul.f32 %v743_v13, %v577_v50  ;;  %v626_v13 = vsel %vm184_vm2, %v622_v62, 0.0 }
  0xef   :  { %v627_v14 = vadd.f32 %v626_v13, %v625_v11 }
  0xf0   :  { %v745_v32 = vpop.eup %744 }
  0xf1   :  { %v747_v33 = vpop.eup %746  ;;  %v379_v35 = vmul.f32 0.6931472, %v745_v32  ;;  %v629_v19 = vadd.f32 %v628_v24, %v627_v14  ;;  %v276_v32 = vpop.xlane.xlu0 %275 }
  0xf2   :  { %v176_v37 = vmul.f32 0.6931472, %v747_v33  ;;  %v277_v33 = vadd.f32 %v276_v32, %v965_v23 }
  0xf3   :  { %v385_v41 = vsel %vm384_vm3, %v382_v36, %v379_v35  ;;  %v631_v30 = vadd.f32 %v630_v9, %v629_v19  ;;  %v611_v9 = vsel %vm70_vm0, %v610_v25, 0.0 }
  0xf4   :  { %v386_v42 = vadd.f32 %v385_v41, %v372_v34  ;;  %v182_v43 = vsel %vm181_vm4, %v179_v38, %v176_v37  ;;  %v280_v18 = vand.u32 2147483647, %v277_v33 }
  0xf5   :  { %v183_v46 = vadd.f32 %v182_v43, %v169_v40  ;;  %v472_v35 = vpop.xlane.xlu0 %471 }
  0xf6   :  { %v387_v49 = vsel %vm184_vm2, %v386_v42, 0.0  ;;  %v473_v15 = vadd.f32 %v472_v35, %v952_v21  ;;  %v281_v37 = vsub.f32 0.0, %v280_v18 }
  0xf7   :  { %388 = vadd.xlane.f32.xlu0 %v387_v49  ;;  %v185_v51 = vsel %vm184_vm2, %v183_v46, 0.0 }
  0xf8   :  { %186 = vadd.xlane.f32.xlu1 %v185_v51  ;;  %v476_v39 = vand.u32 2147483647, %v473_v15  ;;  %v282_v40 = vmul.f32 1.442695, %v281_v37 }
  0xf9   :  { %v749_v54 = vpop.eup %748 }
  0xfa   :  { %v575_v56 = vmul.f32 0.6931472, %v749_v54  ;;  %v477_v41 = vsub.f32 0.0, %v476_v39 }
  0xfb   :  { %216 = vadd.xlane.f32.xlu0 %v215_v53 }
  0xfc   :  { %v581_v60 = vsel %vm580_vm5, %v578_v57, %v575_v56  ;;  %v478_v42 = vmul.f32 1.442695, %v477_v41  ;;  %v278_v56 = vsub.f32 0.0, %v277_v33 }
  0xfd   :  { %v582_v26 = vadd.f32 %v581_v60, %v568_v58 }
  0xfe   :  { %v279_v63 = vmax.f32 %v278_v56, 0.0 }
  0xff   :  { %v583_v1 = vsel %vm184_vm2, %v582_v26, 0.0  ;;  %416 = vadd.xlane.f32.xlu0 %v415_v61 }
 0x100   :  { %584 = vadd.xlane.f32.xlu1 %v583_v1  ;;  %v474_v1 = vsub.f32 0.0, %v473_v15 }
 0x102   :  { %v475_v11 = vmax.f32 %v474_v1, 0.0 }
 0x104   :  { %205 = vadd.xlane.f32.xlu1 %v204_v8 }
 0x108   :  { %236 = vadd.xlane.f32.xlu1 %v1013_v45  ;;  %v74_v45 = vadd.f32 %v73_v31, %v931_v16 }
 0x10a   :  { %v77_v34 = vand.u32 2147483647, %v74_v45  ;;  %v75_v27 = vsub.f32 0.0, %v74_v45 }
 0x10c   :  { %405 = vadd.xlane.f32.xlu1 %v404_v20  ;;  %v78_v36 = vsub.f32 0.0, %v77_v34  ;;  %v76_v59 = vmax.f32 %v75_v27, 0.0 }
 0x10e   :  { %v79_v38 = vmul.f32 1.442695, %v78_v36 }
 0x110   :  { %436 = vadd.xlane.f32.xlu1 %v435_v10  ;;  %750 = vpow2.f32 %v79_v38 }
 0x111   :  { %752 = vpow2.f32 %v282_v40 }
 0x112   :  { %754 = vpow2.f32 %v478_v42 }
 0x114   :  { %601 = vadd.xlane.f32.xlu1 %v600_v28 }
 0x118   :  { %632 = vadd.xlane.f32.xlu1 %v631_v30 }
 0x11d   :  { %v751_v43 = vpop.eup %750 }
 0x11e   :  { %v753_v44 = vpop.eup %752  ;;  %v81_v16 = vadd.f32 1.0, %v751_v43  ;;  %v84_v48 = vmul.f32 -0.5, %v751_v43  ;;  %v87_v51 = vand.u32 2147483647, %v751_v43 }
 0x11f   :  { %v284_v46 = vadd.f32 1.0, %v753_v44  ;;  %v755_v23 = vpop.eup %754  ;;  %v287_v21 = vmul.f32 -0.5, %v753_v44  ;;  %v290_v54 = vand.u32 2147483647, %v753_v44 }
 0x120   :  { %756 = vlog2.f32 %v81_v16  ;;  %v480_v47 = vadd.f32 1.0, %v755_v23  ;;  %v85_v49 = vadd.f32 1.0, %v84_v48  ;;  %v483_v12 = vmul.f32 -0.5, %v755_v23 }
 0x121   :  { %758 = vlog2.f32 %v284_v46  ;;  %v288_v52 = vadd.f32 1.0, %v287_v21  ;;  %vm88_vm6 = vcmp.lt.f32.partialorder %v87_v51, 0.0004427343  ;;  %vm291_vm7 = vcmp.lt.f32.partialorder %v290_v54, 0.0004427343 }
 0x122   :  { %760 = vlog2.f32 %v480_v47  ;;  %v86_v55 = vmul.f32 %v751_v43, %v85_v49  ;;  %v484_v61 = vadd.f32 1.0, %v483_v12  ;;  %v486_v4 = vand.u32 2147483647, %v755_v23 }
 0x123   :  { %v289_v58 = vmul.f32 %v753_v44, %v288_v52 }
 0x124   :  { %v485_v8 = vmul.f32 %v755_v23, %v484_v61  ;;  %vm487_vm9 = vcmp.lt.f32.partialorder %v486_v4, 0.0004427343 }
 0x12d   :  { %v757_v50 = vpop.eup %756 }
 0x12e   :  { %v759_v53 = vpop.eup %758  ;;  %v83_v6 = vmul.f32 0.6931472, %v757_v50 }
 0x12f   :  { %v286_v57 = vmul.f32 0.6931472, %v759_v53  ;;  %v761_v26 = vpop.eup %760 }
 0x130   :  { %v89_v60 = vsel %vm88_vm6, %v86_v55, %v83_v6  ;;  %v482_v5 = vmul.f32 0.6931472, %v761_v26 }
 0x131   :  { %v292_v0 = vsel %vm291_vm7, %v289_v58, %v286_v57  ;;  %v90_v3 = vadd.f32 %v89_v60, %v76_v59 }
 0x132   :  { %v293_v10 = vadd.f32 %v292_v0, %v279_v63  ;;  %v488_v14 = vsel %vm487_vm9, %v485_v8, %v482_v5 }
 0x133   :  { %v489_v19 = vadd.f32 %v488_v14, %v475_v11 }
 0x180   :  { %v389_v62 = vpop.xlane.xlu0 %388 }
 0x181   :  { %v187_v2 = vpop.xlane.xlu1 %186  ;;  %v390_v13 = vadd.f32 %v389_v62, %v293_v10 }
 0x182   :  { %v188_v7 = vadd.f32 %v187_v2, %v90_v3 }
 0x183   :  { %v391_v24 = vsel %vm189_vm8, %v390_v13, 0.0 }
 0x184   :  { %v190_v22 = vsel %vm189_vm8, %v188_v7, 0.0  ;;  %v217_v45 = vpop.xlane.xlu0 %216 }
 0x185   :  { %191 = vadd.xlane.f32.xlu0 %v190_v22  ;;  %v218_v34 = vrot.slane %v217_v45, 4 }
 0x187   :  { %v219_v15 = vadd.f32 %v218_v34, %v217_v45 }
 0x188   :  { %v417_v18 = vpop.xlane.xlu0 %416 }
 0x189   :  { %392 = vadd.xlane.f32.xlu0 %v391_v24  ;;  %v585_v20 = vpop.xlane.xlu1 %584  ;;  %v418_v29 = vrot.slane %v417_v18, 4  ;;  %v220_v42 = vrot.slane %v219_v15, 2 }
 0x18a   :  { %v586_v17 = vadd.f32 %v585_v20, %v489_v19 }
 0x18b   :  { %v419_v23 = vadd.f32 %v418_v29, %v417_v18  ;;  %v221_v51 = vadd.f32 %v220_v42, %v219_v15 }
 0x18c   :  { %v587_v28 = vsel %vm189_vm8, %v586_v17, 0.0 }
 0x18d   :  { %588 = vadd.xlane.f32.xlu0 %v587_v28  ;;  %v206_v30 = vpop.xlane.xlu1 %205  ;;  %v420_v55 = vrot.slane %v419_v23, 2  ;;  %v222_v61 = vrot.slane %v221_v51, 1 }
 0x18e   :  { %v207_v35 = vrot.slane %v206_v30, 4 }
 0x18f   :  { %v421_v5 = vadd.f32 %v420_v55, %v419_v23  ;;  %v223_v13 = vadd.f32 %v222_v61, %v221_v51 }
 0x190   :  { %v208_v38 = vadd.f32 %v207_v35, %v206_v30 }
 0x191   :  { %612 = vadd.xlane.f32.xlu0 %v611_v9  ;;  %v237_v31 = vpop.xlane.xlu1 %236  ;;  %v422_v30 = vrot.slane %v421_v5, 1 }
 0x192   :  { %v238_v36 = vrot.slane %v237_v31, 4  ;;  %v209_v43 = vrot.slane %v208_v38, 2 }
 0x194   :  { %v239_v40 = vadd.f32 %v238_v36, %v237_v31  ;;  %v210_v6 = vadd.f32 %v209_v43, %v208_v38 }
 0x195   :  { %v406_v32 = vpop.xlane.xlu1 %405 }
 0x196   :  { %v407_v39 = vrot.slane %v406_v32, 4  ;;  %v240_v21 = vrot.slane %v239_v40, 2  ;;  %v211_v0 = vrot.slane %v210_v6, 1 }
 0x198   :  { %v408_v44 = vadd.f32 %v407_v39, %v406_v32  ;;  %v241_v58 = vadd.f32 %v240_v21, %v239_v40  ;;  %v212_v19 = vadd.f32 %v211_v0, %v210_v6 }
 0x199   :  { %v437_v33 = vpop.xlane.xlu1 %436 }
 0x19a   :  { %v438_v41 = vrot.slane %v437_v33, 4  ;;  %v409_v52 = vrot.slane %v408_v44, 2  ;;  %v242_v8 = vrot.slane %v241_v58, 1 }
 0x19c   :  { %v439_v49 = vadd.f32 %v438_v41, %v437_v33  ;;  %v410_v1 = vadd.f32 %v409_v52, %v408_v44  ;;  %v243_v31 = vadd.f32 %v242_v8, %v241_v58 }
 0x19d   :  { %v602_v37 = vpop.xlane.xlu1 %601 }
 0x19e   :  { %v603_v46 = vrot.slane %v602_v37, 4  ;;  %v440_v57 = vrot.slane %v439_v49, 2  ;;  %v411_v20 = vrot.slane %v410_v1, 1 }
 0x1a0   :  { %v604_v53 = vadd.f32 %v603_v46, %v602_v37  ;;  %v441_v10 = vadd.f32 %v440_v57, %v439_v49  ;;  %v412_v18 = vadd.f32 %v411_v20, %v410_v1  ;;  %v423_v37 = vadd.f32 %v422_v30, %v421_v5 }
 0x1a1   :  { %v633_v48 = vpop.xlane.xlu1 %632  ;;  %v50_v46 = vlaneseq }
 0x1a2   :  { %v634_v54 = vrot.slane %v633_v48, 4  ;;  %v605_v26 = vrot.slane %v604_v53, 2  ;;  %v442_v32 = vrot.slane %v441_v10, 1 }
 0x1a3   :  { %v53_v23 = vand.u32 127, %v50_v46  ;;  %v51_v55 = vshrl.u32 %v50_v46, 7 }
 0x1a4   :  { %v635_v63 = vadd.f32 %v634_v54, %v633_v48  ;;  %v606_v17 = vadd.f32 %v605_v26, %v604_v53  ;;  %v443_v39 = vadd.f32 %v442_v32, %v441_v10 }
 0x1a5   :  { %vm248_vm10 = vcmp.eq.s32.totalorder %v53_v23, 3  ;;  %vm247_vm11 = vcmp.eq.s32.totalorder %v53_v23, 2  ;;  %vm246_vm12 = vcmp.eq.s32.totalorder %v53_v23, 1  ;;  %vm245_vm13 = vcmp.eq.s32.totalorder %v53_v23, 0 }
 0x1a6   :  { %v636_v14 = vrot.slane %v635_v63, 2  ;;  %v607_v36 = vrot.slane %v606_v17, 1  ;;  %vm256_vm14 = vcmp.eq.s32.totalorder %v51_v55, 0  ;;  %vm452_vm15 = vcmp.eq.s32.totalorder %v51_v55, 1 }
 0x1a7   :  { %vm648_vm0 = vcmp.eq.s32.totalorder %v51_v55, 2 }
 0x1a8   :  { %v637_v35 = vadd.f32 %v636_v14, %v635_v63  ;;  %v608_v41 = vadd.f32 %v607_v36, %v606_v17 }
 0x1aa   :  { %v638_v42 = vrot.slane %v637_v35, 1 }
 0x20e   :  { %v192_v16 = vpop.xlane.xlu0 %191 }
 0x20f   :  { %v193_v47 = vrot.slane %v192_v16, 4 }
 0x211   :  { %v194_v50 = vadd.f32 %v193_v47, %v192_v16  ;;  %v639_v16 = vadd.f32 %v638_v42, %v637_v35 }
 0x212   :  { %v393_v27 = vpop.xlane.xlu0 %392 }
 0x213   :  { %v195_v12 = vrot.slane %v194_v50, 2  ;;  %v394_v56 = vrot.slane %v393_v27, 4 }
 0x215   :  { %v395_v59 = vadd.f32 %v394_v56, %v393_v27  ;;  %v196_v60 = vadd.f32 %v195_v12, %v194_v50 }
 0x216   :  { %v589_v4 = vpop.xlane.xlu0 %588 }
 0x217   :  { %v396_v3 = vrot.slane %v395_v59, 2  ;;  %v590_v62 = vrot.slane %v589_v4, 4  ;;  %v197_v2 = vrot.slane %v196_v60, 1 }
 0x219   :  { %v591_v7 = vadd.f32 %v590_v62, %v589_v4  ;;  %v198_v11 = vadd.f32 %v197_v2, %v196_v60  ;;  %v397_v22 = vadd.f32 %v396_v3, %v395_v59 }
 0x21a   :  { %v613_v24 = vpop.xlane.xlu0 %612 }
 0x21b   :  { %v592_v25 = vrot.slane %v591_v7, 2  ;;  %v614_v28 = vrot.slane %v613_v24, 4  ;;  %709 = vpush %v198_v11  ;;  %v398_v9 = vrot.slane %v397_v22, 1 }
 0x21c   :  { %711 = vpush %v212_v19 }
 0x21d   :  { %v615_v45 = vadd.f32 %v614_v28, %v613_v24  ;;  %713 = vpush %v223_v13  ;;  %v399_v33 = vadd.f32 %v398_v9, %v397_v22  ;;  %v593_v34 = vadd.f32 %v592_v25, %v591_v7 }
 0x21e   :  { %715 = vpush %v243_v31 }
 0x21f   :  { %v616_v15 = vrot.slane %v615_v45, 2  ;;  %717 = vpush %v399_v33  ;;  %v594_v38 = vrot.slane %v593_v34, 1 }
 0x220   :  { %719 = vpush %v412_v18 }
 0x221   :  { %v617_v29 = vadd.f32 %v616_v15, %v615_v45  ;;  %721 = vpush %v423_v37  ;;  %v595_v40 = vadd.f32 %v594_v38, %v593_v34 }
 0x222   :  { %723 = vpush %v443_v39 }
 0x223   :  { %725 = vpush %v595_v40  ;;  %v618_v43 = vrot.slane %v617_v29, 1 }
 0x224   :  { %727 = vpush %v608_v41 }
 0x225   :  { %v619_v44 = vadd.f32 %v618_v43, %v617_v29 }
 0x227   :  { %729 = vpush %v619_v44 }
 0x228   :  { %731 = vpush %v639_v16 }
 0x24c   :  { %s710_s1 = spop %709 }
 0x24d   :  { %s712_s6 = spop %711  ;;  %v200_v49 = vstv %s710_s1 }
 0x24e   :  { %s714_s11 = spop %713  ;;  %v202_v54 = vmul.f32 0.125, %v200_v49  ;;  %v253_v6 = vstv %s712_s6 }
 0x24f   :  { %s716_s23 = spop %715  ;;  %v251_v48 = vstv %s714_s11 }
 0x250   :  { %v249_v47 = vstv %s716_s23  ;;  %s718_s3 = spop %717 }
 0x251   :  { %v250_v21 = vsel %vm248_vm10, %v249_v47, 0.0  ;;  %s720_s5 = spop %719  ;;  %v401_v52 = vstv %s718_s3 }
 0x252   :  { %s722_s2 = spop %721  ;;  %v252_v51 = vsel %vm247_vm11, %v251_v48, %v250_v21  ;;  %v402_v57 = vmul.f32 0.125, %v401_v52  ;;  %v449_v58 = vstv %s720_s5 }
 0x253   :  { %v447_v50 = vstv %s722_s2  ;;  %s724_s7 = spop %723  ;;  %v254_v56 = vsel %vm246_vm12, %v253_v6, %v252_v51 }
 0x254   :  { %v445_v53 = vstv %s724_s7  ;;  %s726_s8 = spop %725  ;;  %v255_v26 = vsel %vm245_vm13, %v202_v54, %v254_v56 }
 0x255   :  { %v446_v27 = vsel %vm248_vm10, %v445_v53, 0.0  ;;  %s728_s24 = spop %727  ;;  %v597_v60 = vstv %s726_s8  ;;  %v257_v2 = vsel %vm256_vm14, %v255_v26, 0.0 }
 0x256   :  { %v448_v12 = vsel %vm247_vm11, %v447_v50, %v446_v27  ;;  %v598_v1 = vmul.f32 0.125, %v597_v60  ;;  %v645_v3 = vstv %s728_s24 }
 0x257   :  { %v450_v59 = vsel %vm246_vm12, %v449_v58, %v448_v12 }
 0x258   :  { %s730_s25 = spop %729  ;;  %v451_v4 = vsel %vm245_vm13, %v402_v57, %v450_v59 }
 0x259   :  { %v643_v61 = vstv %s730_s25  ;;  %s732_s26 = spop %731  ;;  %v453_v8 = vsel %vm452_vm15, %v451_v4, %v257_v2 }
 0x25a   :  { %v641_v63 = vstv %s732_s26 }
 0x25b   :  { %v642_v0 = vsel %vm248_vm10, %v641_v63, 0.0 }
 0x25c   :  { %v644_v62 = vsel %vm247_vm11, %v643_v61, %v642_v0 }
 0x25d   :  { %v646_v5 = vsel %vm246_vm12, %v645_v3, %v644_v62 }
 0x25e   :  { %v647_v10 = vsel %vm245_vm13, %v598_v1, %v646_v5 }
 0x25f   :  { %v649_v7 = vsel %vm648_vm0, %v647_v10, %v453_v8 }
 0x260   :  { %650 = vst [vmem:[%s1097_s15] sm:$0xff] %v649_v7 }

</bundles_post_ra>
